<compile_context>
chip_gen: v5e
topology: v5e:2x2
jax: 0.10.0
libtpu: 0.0.40
codegen_flags: <defaults>
</compile_context>

<pallas_src>
import functools

import jax
import jax.numpy as jnp
from jax.experimental import pallas as pl
from jax.experimental.pallas import tpu as pltpu


# ----------------------------------------------------------------------------
# Pallas kernel
# ----------------------------------------------------------------------------
def encoder_kernel(
    x_ref,        # (Bb, Tm1, D)  batch-first input series (one B-block)
    w_x_ref,      # (Tm1, 1)      attn weight slice for the input time series
    w_ih_t_ref,   # (D, 4H)       LSTM input->gates weight, transposed
    w_hh_t_ref,   # (H, 4H)       LSTM hidden->gates weight, transposed
    b_ref,        # (1, 4H)       b_ih + b_hh
    out_w_ref,    # (Bb, Tm1, D)  weighted inputs
    out_e_ref,    # (Bb, Tm1, H)  encoded hidden states
):
    Bb, Tm1, D = x_ref.shape
    H = w_hh_t_ref.shape[0]

    w_x = w_x_ref[...]                 # (Tm1, 1)
    w_ih_t = w_ih_t_ref[...]           # (D, 4H)
    w_hh_t = w_hh_t_ref[...]           # (H, 4H)
    b = b_ref[...]                     # (1, 4H)

    # ---- time-invariant attention + bulk input-side gate precompute --------
    # score[b, d] = w_h.h + w_c.c + sum_s w_x[s] x[b, s, d] + bias.  The
    # h/c/bias terms are constant along d, so they cancel inside the softmax:
    # alpha is identical for every t and never depends on the recurrent state.
    gx_rows = []                       # per batch row: (Tm1, 4H) gate pre-activations
    for i in range(Bb):
        x_i = x_ref[i]                                             # (Tm1, D)
        x_part = jnp.sum(x_i * w_x, axis=0, keepdims=True)         # (1, D)
        scores = x_part - jnp.max(x_part, axis=-1, keepdims=True)
        num = jnp.exp(scores)
        alpha = num * pl.reciprocal(jnp.sum(num, axis=-1, keepdims=True))  # (1, D)

        weighted_i = alpha * x_i                                   # (Tm1, D)
        out_w_ref[i] = weighted_i          # one store for all time steps of row i

        # Input->gates contribution for ALL steps in a single MXU dot,
        # entirely off the recurrent critical path.
        gx_rows.append(
            jnp.dot(weighted_i, w_ih_t, preferred_element_type=jnp.float32) + b
        )                                                          # (Tm1, 4H)

    # ---- serial LSTM recurrence, fully unrolled (Tm1 static & small) -------
    # Per step, only one (Bb, H) x (H, 4H) matmul sits on the h->h chain.
    h = jnp.zeros((Bb, H), jnp.float32)
    c = jnp.zeros((Bb, H), jnp.float32)
    hs = []
    for t in range(Tm1):
        gx_t = jnp.concatenate(
            [gx_rows[i][t:t + 1, :] for i in range(Bb)], axis=0)   # (Bb, 4H), off-chain
        gates = gx_t + jnp.dot(h, w_hh_t, preferred_element_type=jnp.float32)

        # Full-width transcendentals once, then slice (PyTorch gate order i,f,g,o).
        sig = jax.nn.sigmoid(gates)
        tnh = jnp.tanh(gates)
        i_g = sig[:, 0 * H:1 * H]
        f_g = sig[:, 1 * H:2 * H]
        g_g = tnh[:, 2 * H:3 * H]
        o_g = sig[:, 3 * H:4 * H]

        c = f_g * c + i_g * g_g
        h = o_g * jnp.tanh(c)
        hs.append(h)

    # ---- one store per batch row, after the loop ----------------------------
    for i in range(Bb):
        enc_i = jnp.concatenate([hs[t][i:i + 1, :] for t in range(Tm1)], axis=0)
        out_e_ref[i] = enc_i                                       # (Tm1, H)


# ----------------------------------------------------------------------------
# Wrapper (parameter reshaping + grid selection)
# ----------------------------------------------------------------------------
def _two_tensorcores_per_chip() -> bool:
    """True on TPU generations with 2 TensorCores per chip exposed to one program (v7x)."""
    try:
        kind = jax.devices()[0].device_kind.lower().replace(" ", "")
    except Exception:
        return False
    return ("v7" in kind) or ("tpu7" in kind)


@jax.jit
def encoder_forward(x, attn_w, attn_b, w_ih, w_hh, b_ih, b_hh):
    """x: (B, T-1, input_size) float32. Returns (input_weighted, input_encoded)."""
    B, Tm1, D = x.shape
    H = w_hh.shape[1]

    x = x.astype(jnp.float32)
    # Only the time-series slice of the attention weight matters inside the
    # kernel: the hidden/cell/bias contributions are constant along the
    # softmax axis and cancel exactly, so attn_w[:, :2H] and attn_b are unused.
    w_x = attn_w[:, 2 * H:].reshape(Tm1, 1).astype(jnp.float32)    # (Tm1, 1)
    w_ih_t = w_ih.T.astype(jnp.float32)                            # (D, 4H)
    w_hh_t = w_hh.T.astype(jnp.float32)                            # (H, 4H)
    b = (b_ih + b_hh).reshape(1, 4 * H).astype(jnp.float32)        # (1, 4H)

    # Split the (independent) batch recurrences across the two TensorCores on
    # v7x; keep a single grid step on single-TC generations (v5e/v6e), where a
    # grid would only serialize the rows and add per-step overhead.
    b_blk = 1 if (_two_tensorcores_per_chip() and B > 1) else B
    grid = (B // b_blk,)

    out_w, out_e = pl.pallas_call(
        encoder_kernel,
        grid=grid,
        in_specs=[
            pl.BlockSpec((b_blk, Tm1, D), lambda i: (i, 0, 0)),    # x
            pl.BlockSpec((Tm1, 1), lambda i: (0, 0)),              # w_x
            pl.BlockSpec((D, 4 * H), lambda i: (0, 0)),            # w_ih_t
            pl.BlockSpec((H, 4 * H), lambda i: (0, 0)),            # w_hh_t
            pl.BlockSpec((1, 4 * H), lambda i: (0, 0)),            # b
        ],
        out_specs=(
            pl.BlockSpec((b_blk, Tm1, D), lambda i: (i, 0, 0)),    # weighted inputs
            pl.BlockSpec((b_blk, Tm1, H), lambda i: (i, 0, 0)),    # encoded hidden
        ),
        out_shape=(
            jax.ShapeDtypeStruct((B, Tm1, D), jnp.float32),
            jax.ShapeDtypeStruct((B, Tm1, H), jnp.float32),
        ),
        compiler_params=pltpu.CompilerParams(
            dimension_semantics=("parallel",)),
    )(x, w_x, w_ih_t, w_hh_t, b)

    return out_w, out_e


# ----------------------------------------------------------------------------
# Pure-JAX reference (mirrors the PyTorch forward exactly, incl. h/c attn terms)
# ----------------------------------------------------------------------------
def encoder_reference(x, attn_w, attn_b, w_ih, w_hh, b_ih, b_hh):
    B, Tm1, D = x.shape
    H = w_hh.shape[1]
    h = jnp.zeros((B, H), jnp.float32)
    c = jnp.zeros((B, H), jnp.float32)
    x_perm = jnp.transpose(x, (0, 2, 1))                           # (B, D, Tm1)
    outs_w, outs_e = [], []
    for t in range(Tm1):
        h_rep = jnp.broadcast_to(h[:, None, :], (B, D, H))
        c_rep = jnp.broadcast_to(c[:, None, :], (B, D, H))
        cat = jnp.concatenate([h_rep, c_rep, x_perm], axis=2)      # (B, D, 2H+Tm1)
        scores = cat.reshape(-1, 2 * H + Tm1) @ attn_w.T + attn_b  # (B*D, 1)
        alpha = jax.nn.softmax(scores.reshape(B, D), axis=1)
        weighted = alpha * x[:, t, :]
        gates = weighted @ w_ih.T + b_ih + h @ w_hh.T + b_hh
        i_g = jax.nn.sigmoid(gates[:, :H])
        f_g = jax.nn.sigmoid(gates[:, H:2 * H])
        g_g = jnp.tanh(gates[:, 2 * H:3 * H])
        o_g = jax.nn.sigmoid(gates[:, 3 * H:])
        c = f_g * c + i_g * g_g
        h = o_g * jnp.tanh(c)
        outs_w.append(weighted)
        outs_e.append(h)
    return jnp.stack(outs_w, axis=1), jnp.stack(outs_e, axis=1)


# ----------------------------------------------------------------------------
# Main
# ----------------------------------------------------------------------------
if __name__ == "__main__":
    # Small shapes consistent with the module: input_size=8, hidden_size=16, T=10
    B, D, H, T = 2, 8, 16, 10
    Tm1 = T - 1

    key = jax.random.PRNGKey(0)
    k_x, k_aw, k_ab, k_wih, k_whh, k_bih, k_bhh = jax.random.split(key, 7)

    # Deterministic synthetic parameters (shapes from nn.LSTM / nn.Linear in __init__)
    scale = 1.0 / jnp.sqrt(jnp.float32(H))
    x = jax.random.normal(k_x, (B, Tm1, D), jnp.float32)
    attn_w = jax.random.uniform(k_aw, (1, 2 * H + Tm1), jnp.float32, -scale, scale)
    attn_b = jax.random.uniform(k_ab, (1,), jnp.float32, -scale, scale)
    w_ih = jax.random.uniform(k_wih, (4 * H, D), jnp.float32, -scale, scale)
    w_hh = jax.random.uniform(k_whh, (4 * H, H), jnp.float32, -scale, scale)
    b_ih = jax.random.uniform(k_bih, (4 * H,), jnp.float32, -scale, scale)
    b_hh = jax.random.uniform(k_bhh, (4 * H,), jnp.float32, -scale, scale)

    out_w, out_e = encoder_forward(x, attn_w, attn_b, w_ih, w_hh, b_ih, b_hh)
    jax.block_until_ready((out_w, out_e))

    ref_w, ref_e = encoder_reference(x, attn_w, attn_b, w_ih, w_hh, b_ih, b_hh)
    assert out_w.shape == (B, Tm1, D) and out_e.shape == (B, Tm1, H)
    # Tolerance 1e-4: the kernel exploits the exact algebraic cancellation of the
    # h/c/bias attention terms inside the softmax, which reorders f32 arithmetic
    # relative to the literal reference (differences are O(1e-6)).
    assert jnp.allclose(out_w, ref_w, atol=1e-4, rtol=1e-4)
    assert jnp.allclose(out_e, ref_e, atol=1e-4, rtol=1e-4)

    print("KERNEL_OK")
</pallas_src>

<mosaic_0001>
module attributes {stable_mosaic.version = 11 : i64} {
  func.func @encoder_kernel(%arg0: i32, %arg1: memref<2x9x8xf32, #tpu.memory_space<vmem>>, %arg2: memref<9x1xf32, #tpu.memory_space<vmem>>, %arg3: memref<8x64xf32, #tpu.memory_space<vmem>>, %arg4: memref<16x64xf32, #tpu.memory_space<vmem>>, %arg5: memref<1x64xf32, #tpu.memory_space<vmem>>, %arg6: memref<2x9x8xf32, #tpu.memory_space<vmem>>, %arg7: memref<2x9x16xf32, #tpu.memory_space<vmem>>) attributes {dimension_semantics = [#tpu.dimension_semantics<parallel>], iteration_bounds = array<i64: 1>, scalar_prefetch = 0 : i64, scratch_operands = 0 : i64, tpu.core_type = #tpu.core_type<tc>, window_params = [{transform_indices = @transform_0, window_bounds = array<i64: 2, 9, 8>}, {pipeline_mode = #tpu.pipeline_mode<synchronous>, transform_indices = @transform_1, window_bounds = array<i64: 9, 1>}, {pipeline_mode = #tpu.pipeline_mode<synchronous>, transform_indices = @transform_2, window_bounds = array<i64: 8, 64>}, {pipeline_mode = #tpu.pipeline_mode<synchronous>, transform_indices = @transform_3, window_bounds = array<i64: 16, 64>}, {pipeline_mode = #tpu.pipeline_mode<synchronous>, transform_indices = @transform_4, window_bounds = array<i64: 1, 64>}, {transform_indices = @transform_5, window_bounds = array<i64: 2, 9, 8>}, {transform_indices = @transform_6, window_bounds = array<i64: 2, 9, 16>}]} {
    %c0 = arith.constant 0 : index
    %c0_0 = arith.constant 0 : index
    %0 = vector.load %arg2[%c0, %c0_0] : memref<9x1xf32, #tpu.memory_space<vmem>>, vector<9x1xf32>
    %c0_1 = arith.constant 0 : index
    %c0_2 = arith.constant 0 : index
    %1 = vector.load %arg3[%c0_1, %c0_2] : memref<8x64xf32, #tpu.memory_space<vmem>>, vector<8x64xf32>
    %c0_3 = arith.constant 0 : index
    %c0_4 = arith.constant 0 : index
    %2 = vector.load %arg4[%c0_3, %c0_4] : memref<16x64xf32, #tpu.memory_space<vmem>>, vector<16x64xf32>
    %c0_5 = arith.constant 0 : index
    %c0_6 = arith.constant 0 : index
    %3 = vector.load %arg5[%c0_5, %c0_6] : memref<1x64xf32, #tpu.memory_space<vmem>>, vector<1x64xf32>
    %c0_7 = arith.constant 0 : index
    %c0_8 = arith.constant 0 : index
    %c0_9 = arith.constant 0 : index
    %4 = vector.load %arg1[%c0_7, %c0_8, %c0_9] : memref<2x9x8xf32, #tpu.memory_space<vmem>>, vector<1x9x8xf32>
    %5 = vector.shape_cast %4 : vector<1x9x8xf32> to vector<9x8xf32>
    %6 = vector.broadcast %0 : vector<9x1xf32> to vector<9x8xf32>
    %7 = arith.mulf %5, %6 : vector<9x8xf32>
    %cst = arith.constant dense<0.000000e+00> : vector<8xf32>
    %8 = vector.multi_reduction <add>, %7, %cst [0] : vector<9x8xf32> to vector<8xf32>
    %9 = vector.shape_cast %8 : vector<8xf32> to vector<1x8xf32>
    %cst_10 = arith.constant dense<0xFF800000> : vector<1xf32>
    %10 = vector.multi_reduction <maximumf>, %9, %cst_10 [1] : vector<1x8xf32> to vector<1xf32>
    %11 = vector.shape_cast %10 : vector<1xf32> to vector<1x1xf32>
    %12 = vector.broadcast %11 : vector<1x1xf32> to vector<1x8xf32>
    %13 = arith.subf %9, %12 : vector<1x8xf32>
    %14 = math.exp %13 : vector<1x8xf32>
    %cst_11 = arith.constant dense<0.000000e+00> : vector<1xf32>
    %15 = vector.multi_reduction <add>, %14, %cst_11 [1] : vector<1x8xf32> to vector<1xf32>
    %16 = vector.shape_cast %15 : vector<1xf32> to vector<1x1xf32>
    %17 = tpu.reciprocal %16 : vector<1x1xf32> -> vector<1x1xf32>
    %18 = vector.broadcast %17 : vector<1x1xf32> to vector<1x8xf32>
    %19 = arith.mulf %14, %18 : vector<1x8xf32>
    %20 = vector.broadcast %19 : vector<1x8xf32> to vector<9x8xf32>
    %21 = arith.mulf %20, %5 : vector<9x8xf32>
    %c0_12 = arith.constant 0 : index
    %c0_13 = arith.constant 0 : index
    %c0_14 = arith.constant 0 : index
    %22 = vector.load %arg6[%c0_12, %c0_13, %c0_14] : memref<2x9x8xf32, #tpu.memory_space<vmem>>, vector<1x9x8xf32>
    %23 = vector.shape_cast %22 : vector<1x9x8xf32> to vector<9x8xf32>
    %24 = vector.shape_cast %21 : vector<9x8xf32> to vector<1x9x8xf32>
    tpu.vector_store %arg6[%c0_12, %c0_13, %c0_14], %24 {strides = array<i32>} : memref<2x9x8xf32, #tpu.memory_space<vmem>>, vector<1x9x8xf32>,
    %cst_15 = arith.constant dense<0.000000e+00> : vector<9x64xf32>
    %25 = tpu.matmul %21, %1, %cst_15 {dimension_numbers = #tpu.dot_dimension_numbers<[1], [0], [0], [1], [0, 0, 1, 1], [], []>} : vector<9x8xf32>, vector<8x64xf32>, vector<9x64xf32> -> vector<9x64xf32>
    %26 = vector.broadcast %3 : vector<1x64xf32> to vector<9x64xf32>
    %27 = arith.addf %25, %26 : vector<9x64xf32>
    %c1 = arith.constant 1 : index
    %c0_16 = arith.constant 0 : index
    %c0_17 = arith.constant 0 : index
    %28 = vector.load %arg1[%c1, %c0_16, %c0_17] : memref<2x9x8xf32, #tpu.memory_space<vmem>>, vector<1x9x8xf32>
    %29 = vector.shape_cast %28 : vector<1x9x8xf32> to vector<9x8xf32>
    %30 = vector.broadcast %0 : vector<9x1xf32> to vector<9x8xf32>
    %31 = arith.mulf %29, %30 : vector<9x8xf32>
    %cst_18 = arith.constant dense<0.000000e+00> : vector<8xf32>
    %32 = vector.multi_reduction <add>, %31, %cst_18 [0] : vector<9x8xf32> to vector<8xf32>
    %33 = vector.shape_cast %32 : vector<8xf32> to vector<1x8xf32>
    %cst_19 = arith.constant dense<0xFF800000> : vector<1xf32>
    %34 = vector.multi_reduction <maximumf>, %33, %cst_19 [1] : vector<1x8xf32> to vector<1xf32>
    %35 = vector.shape_cast %34 : vector<1xf32> to vector<1x1xf32>
    %36 = vector.broadcast %35 : vector<1x1xf32> to vector<1x8xf32>
    %37 = arith.subf %33, %36 : vector<1x8xf32>
    %38 = math.exp %37 : vector<1x8xf32>
    %cst_20 = arith.constant dense<0.000000e+00> : vector<1xf32>
    %39 = vector.multi_reduction <add>, %38, %cst_20 [1] : vector<1x8xf32> to vector<1xf32>
    %40 = vector.shape_cast %39 : vector<1xf32> to vector<1x1xf32>
    %41 = tpu.reciprocal %40 : vector<1x1xf32> -> vector<1x1xf32>
    %42 = vector.broadcast %41 : vector<1x1xf32> to vector<1x8xf32>
    %43 = arith.mulf %38, %42 : vector<1x8xf32>
    %44 = vector.broadcast %43 : vector<1x8xf32> to vector<9x8xf32>
    %45 = arith.mulf %44, %29 : vector<9x8xf32>
    %c1_21 = arith.constant 1 : index
    %c0_22 = arith.constant 0 : index
    %c0_23 = arith.constant 0 : index
    %46 = vector.load %arg6[%c1_21, %c0_22, %c0_23] : memref<2x9x8xf32, #tpu.memory_space<vmem>>, vector<1x9x8xf32>
    %47 = vector.shape_cast %46 : vector<1x9x8xf32> to vector<9x8xf32>
    %48 = vector.shape_cast %45 : vector<9x8xf32> to vector<1x9x8xf32>
    tpu.vector_store %arg6[%c1_21, %c0_22, %c0_23], %48 {strides = array<i32>} : memref<2x9x8xf32, #tpu.memory_space<vmem>>, vector<1x9x8xf32>,
    %cst_24 = arith.constant dense<0.000000e+00> : vector<9x64xf32>
    %49 = tpu.matmul %45, %1, %cst_24 {dimension_numbers = #tpu.dot_dimension_numbers<[1], [0], [0], [1], [0, 0, 1, 1], [], []>} : vector<9x8xf32>, vector<8x64xf32>, vector<9x64xf32> -> vector<9x64xf32>
    %50 = vector.broadcast %3 : vector<1x64xf32> to vector<9x64xf32>
    %51 = arith.addf %49, %50 : vector<9x64xf32>
    %cst_25 = arith.constant 0.000000e+00 : f32
    %52 = vector.broadcast %cst_25 : f32 to vector<2x16xf32>
    %cst_26 = arith.constant 0.000000e+00 : f32
    %53 = vector.broadcast %cst_26 : f32 to vector<2x16xf32>
    %54 = vector.extract_strided_slice %27 {offsets = [0, 0], sizes = [1, 64], strides = [1, 1]} : vector<9x64xf32> to vector<1x64xf32>
    %55 = vector.extract_strided_slice %51 {offsets = [0, 0], sizes = [1, 64], strides = [1, 1]} : vector<9x64xf32> to vector<1x64xf32>
    %56 = tpu.concatenate %54, %55 in 0 : vector<1x64xf32>, vector<1x64xf32> -> vector<2x64xf32>
    %cst_27 = arith.constant dense<0.000000e+00> : vector<2x64xf32>
    %57 = tpu.matmul %52, %2, %cst_27 {dimension_numbers = #tpu.dot_dimension_numbers<[1], [0], [0], [1], [0, 0, 1, 1], [], []>} : vector<2x16xf32>, vector<16x64xf32>, vector<2x64xf32> -> vector<2x64xf32>
    %58 = arith.addf %56, %57 : vector<2x64xf32>
    %59 = arith.negf %58 : vector<2x64xf32>
    %60 = math.exp %59 : vector<2x64xf32>
    %cst_28 = arith.constant 1.000000e+00 : f32
    %61 = vector.broadcast %cst_28 : f32 to vector<2x64xf32>
    %62 = arith.addf %61, %60 : vector<2x64xf32>
    %63 = arith.divf %61, %62 : vector<2x64xf32>
    %64 = math.tanh %58 : vector<2x64xf32>
    %65 = vector.extract_strided_slice %63 {offsets = [0, 0], sizes = [2, 16], strides = [1, 1]} : vector<2x64xf32> to vector<2x16xf32>
    %66 = vector.extract_strided_slice %63 {offsets = [0, 16], sizes = [2, 16], strides = [1, 1]} : vector<2x64xf32> to vector<2x16xf32>
    %67 = vector.extract_strided_slice %64 {offsets = [0, 32], sizes = [2, 16], strides = [1, 1]} : vector<2x64xf32> to vector<2x16xf32>
    %68 = vector.extract_strided_slice %63 {offsets = [0, 48], sizes = [2, 16], strides = [1, 1]} : vector<2x64xf32> to vector<2x16xf32>
    %69 = arith.mulf %66, %53 : vector<2x16xf32>
    %70 = arith.mulf %65, %67 : vector<2x16xf32>
    %71 = arith.addf %69, %70 : vector<2x16xf32>
    %72 = math.tanh %71 : vector<2x16xf32>
    %73 = arith.mulf %68, %72 : vector<2x16xf32>
    %74 = vector.extract_strided_slice %27 {offsets = [1, 0], sizes = [1, 64], strides = [1, 1]} : vector<9x64xf32> to vector<1x64xf32>
    %75 = vector.extract_strided_slice %51 {offsets = [1, 0], sizes = [1, 64], strides = [1, 1]} : vector<9x64xf32> to vector<1x64xf32>
    %76 = tpu.concatenate %74, %75 in 0 : vector<1x64xf32>, vector<1x64xf32> -> vector<2x64xf32>
    %cst_29 = arith.constant dense<0.000000e+00> : vector<2x64xf32>
    %77 = tpu.matmul %73, %2, %cst_29 {dimension_numbers = #tpu.dot_dimension_numbers<[1], [0], [0], [1], [0, 0, 1, 1], [], []>} : vector<2x16xf32>, vector<16x64xf32>, vector<2x64xf32> -> vector<2x64xf32>
    %78 = arith.addf %76, %77 : vector<2x64xf32>
    %79 = arith.negf %78 : vector<2x64xf32>
    %80 = math.exp %79 : vector<2x64xf32>
    %cst_30 = arith.constant 1.000000e+00 : f32
    %81 = vector.broadcast %cst_30 : f32 to vector<2x64xf32>
    %82 = arith.addf %81, %80 : vector<2x64xf32>
    %83 = arith.divf %81, %82 : vector<2x64xf32>
    %84 = math.tanh %78 : vector<2x64xf32>
    %85 = vector.extract_strided_slice %83 {offsets = [0, 0], sizes = [2, 16], strides = [1, 1]} : vector<2x64xf32> to vector<2x16xf32>
    %86 = vector.extract_strided_slice %83 {offsets = [0, 16], sizes = [2, 16], strides = [1, 1]} : vector<2x64xf32> to vector<2x16xf32>
    %87 = vector.extract_strided_slice %84 {offsets = [0, 32], sizes = [2, 16], strides = [1, 1]} : vector<2x64xf32> to vector<2x16xf32>
    %88 = vector.extract_strided_slice %83 {offsets = [0, 48], sizes = [2, 16], strides = [1, 1]} : vector<2x64xf32> to vector<2x16xf32>
    %89 = arith.mulf %86, %71 : vector<2x16xf32>
    %90 = arith.mulf %85, %87 : vector<2x16xf32>
    %91 = arith.addf %89, %90 : vector<2x16xf32>
    %92 = math.tanh %91 : vector<2x16xf32>
    %93 = arith.mulf %88, %92 : vector<2x16xf32>
    %94 = vector.extract_strided_slice %27 {offsets = [2, 0], sizes = [1, 64], strides = [1, 1]} : vector<9x64xf32> to vector<1x64xf32>
    %95 = vector.extract_strided_slice %51 {offsets = [2, 0], sizes = [1, 64], strides = [1, 1]} : vector<9x64xf32> to vector<1x64xf32>
    %96 = tpu.concatenate %94, %95 in 0 : vector<1x64xf32>, vector<1x64xf32> -> vector<2x64xf32>
    %cst_31 = arith.constant dense<0.000000e+00> : vector<2x64xf32>
    %97 = tpu.matmul %93, %2, %cst_31 {dimension_numbers = #tpu.dot_dimension_numbers<[1], [0], [0], [1], [0, 0, 1, 1], [], []>} : vector<2x16xf32>, vector<16x64xf32>, vector<2x64xf32> -> vector<2x64xf32>
    %98 = arith.addf %96, %97 : vector<2x64xf32>
    %99 = arith.negf %98 : vector<2x64xf32>
    %100 = math.exp %99 : vector<2x64xf32>
    %cst_32 = arith.constant 1.000000e+00 : f32
    %101 = vector.broadcast %cst_32 : f32 to vector<2x64xf32>
    %102 = arith.addf %101, %100 : vector<2x64xf32>
    %103 = arith.divf %101, %102 : vector<2x64xf32>
    %104 = math.tanh %98 : vector<2x64xf32>
    %105 = vector.extract_strided_slice %103 {offsets = [0, 0], sizes = [2, 16], strides = [1, 1]} : vector<2x64xf32> to vector<2x16xf32>
    %106 = vector.extract_strided_slice %103 {offsets = [0, 16], sizes = [2, 16], strides = [1, 1]} : vector<2x64xf32> to vector<2x16xf32>
    %107 = vector.extract_strided_slice %104 {offsets = [0, 32], sizes = [2, 16], strides = [1, 1]} : vector<2x64xf32> to vector<2x16xf32>
    %108 = vector.extract_strided_slice %103 {offsets = [0, 48], sizes = [2, 16], strides = [1, 1]} : vector<2x64xf32> to vector<2x16xf32>
    %109 = arith.mulf %106, %91 : vector<2x16xf32>
    %110 = arith.mulf %105, %107 : vector<2x16xf32>
    %111 = arith.addf %109, %110 : vector<2x16xf32>
    %112 = math.tanh %111 : vector<2x16xf32>
    %113 = arith.mulf %108, %112 : vector<2x16xf32>
    %114 = vector.extract_strided_slice %27 {offsets = [3, 0], sizes = [1, 64], strides = [1, 1]} : vector<9x64xf32> to vector<1x64xf32>
    %115 = vector.extract_strided_slice %51 {offsets = [3, 0], sizes = [1, 64], strides = [1, 1]} : vector<9x64xf32> to vector<1x64xf32>
    %116 = tpu.concatenate %114, %115 in 0 : vector<1x64xf32>, vector<1x64xf32> -> vector<2x64xf32>
    %cst_33 = arith.constant dense<0.000000e+00> : vector<2x64xf32>
    %117 = tpu.matmul %113, %2, %cst_33 {dimension_numbers = #tpu.dot_dimension_numbers<[1], [0], [0], [1], [0, 0, 1, 1], [], []>} : vector<2x16xf32>, vector<16x64xf32>, vector<2x64xf32> -> vector<2x64xf32>
    %118 = arith.addf %116, %117 : vector<2x64xf32>
    %119 = arith.negf %118 : vector<2x64xf32>
    %120 = math.exp %119 : vector<2x64xf32>
    %cst_34 = arith.constant 1.000000e+00 : f32
    %121 = vector.broadcast %cst_34 : f32 to vector<2x64xf32>
    %122 = arith.addf %121, %120 : vector<2x64xf32>
    %123 = arith.divf %121, %122 : vector<2x64xf32>
    %124 = math.tanh %118 : vector<2x64xf32>
    %125 = vector.extract_strided_slice %123 {offsets = [0, 0], sizes = [2, 16], strides = [1, 1]} : vector<2x64xf32> to vector<2x16xf32>
    %126 = vector.extract_strided_slice %123 {offsets = [0, 16], sizes = [2, 16], strides = [1, 1]} : vector<2x64xf32> to vector<2x16xf32>
    %127 = vector.extract_strided_slice %124 {offsets = [0, 32], sizes = [2, 16], strides = [1, 1]} : vector<2x64xf32> to vector<2x16xf32>
    %128 = vector.extract_strided_slice %123 {offsets = [0, 48], sizes = [2, 16], strides = [1, 1]} : vector<2x64xf32> to vector<2x16xf32>
    %129 = arith.mulf %126, %111 : vector<2x16xf32>
    %130 = arith.mulf %125, %127 : vector<2x16xf32>
    %131 = arith.addf %129, %130 : vector<2x16xf32>
    %132 = math.tanh %131 : vector<2x16xf32>
    %133 = arith.mulf %128, %132 : vector<2x16xf32>
    %134 = vector.extract_strided_slice %27 {offsets = [4, 0], sizes = [1, 64], strides = [1, 1]} : vector<9x64xf32> to vector<1x64xf32>
    %135 = vector.extract_strided_slice %51 {offsets = [4, 0], sizes = [1, 64], strides = [1, 1]} : vector<9x64xf32> to vector<1x64xf32>
    %136 = tpu.concatenate %134, %135 in 0 : vector<1x64xf32>, vector<1x64xf32> -> vector<2x64xf32>
    %cst_35 = arith.constant dense<0.000000e+00> : vector<2x64xf32>
    %137 = tpu.matmul %133, %2, %cst_35 {dimension_numbers = #tpu.dot_dimension_numbers<[1], [0], [0], [1], [0, 0, 1, 1], [], []>} : vector<2x16xf32>, vector<16x64xf32>, vector<2x64xf32> -> vector<2x64xf32>
    %138 = arith.addf %136, %137 : vector<2x64xf32>
    %139 = arith.negf %138 : vector<2x64xf32>
    %140 = math.exp %139 : vector<2x64xf32>
    %cst_36 = arith.constant 1.000000e+00 : f32
    %141 = vector.broadcast %cst_36 : f32 to vector<2x64xf32>
    %142 = arith.addf %141, %140 : vector<2x64xf32>
    %143 = arith.divf %141, %142 : vector<2x64xf32>
    %144 = math.tanh %138 : vector<2x64xf32>
    %145 = vector.extract_strided_slice %143 {offsets = [0, 0], sizes = [2, 16], strides = [1, 1]} : vector<2x64xf32> to vector<2x16xf32>
    %146 = vector.extract_strided_slice %143 {offsets = [0, 16], sizes = [2, 16], strides = [1, 1]} : vector<2x64xf32> to vector<2x16xf32>
    %147 = vector.extract_strided_slice %144 {offsets = [0, 32], sizes = [2, 16], strides = [1, 1]} : vector<2x64xf32> to vector<2x16xf32>
    %148 = vector.extract_strided_slice %143 {offsets = [0, 48], sizes = [2, 16], strides = [1, 1]} : vector<2x64xf32> to vector<2x16xf32>
    %149 = arith.mulf %146, %131 : vector<2x16xf32>
    %150 = arith.mulf %145, %147 : vector<2x16xf32>
    %151 = arith.addf %149, %150 : vector<2x16xf32>
    %152 = math.tanh %151 : vector<2x16xf32>
    %153 = arith.mulf %148, %152 : vector<2x16xf32>
    %154 = vector.extract_strided_slice %27 {offsets = [5, 0], sizes = [1, 64], strides = [1, 1]} : vector<9x64xf32> to vector<1x64xf32>
    %155 = vector.extract_strided_slice %51 {offsets = [5, 0], sizes = [1, 64], strides = [1, 1]} : vector<9x64xf32> to vector<1x64xf32>
    %156 = tpu.concatenate %154, %155 in 0 : vector<1x64xf32>, vector<1x64xf32> -> vector<2x64xf32>
    %cst_37 = arith.constant dense<0.000000e+00> : vector<2x64xf32>
    %157 = tpu.matmul %153, %2, %cst_37 {dimension_numbers = #tpu.dot_dimension_numbers<[1], [0], [0], [1], [0, 0, 1, 1], [], []>} : vector<2x16xf32>, vector<16x64xf32>, vector<2x64xf32> -> vector<2x64xf32>
    %158 = arith.addf %156, %157 : vector<2x64xf32>
    %159 = arith.negf %158 : vector<2x64xf32>
    %160 = math.exp %159 : vector<2x64xf32>
    %cst_38 = arith.constant 1.000000e+00 : f32
    %161 = vector.broadcast %cst_38 : f32 to vector<2x64xf32>
    %162 = arith.addf %161, %160 : vector<2x64xf32>
    %163 = arith.divf %161, %162 : vector<2x64xf32>
    %164 = math.tanh %158 : vector<2x64xf32>
    %165 = vector.extract_strided_slice %163 {offsets = [0, 0], sizes = [2, 16], strides = [1, 1]} : vector<2x64xf32> to vector<2x16xf32>
    %166 = vector.extract_strided_slice %163 {offsets = [0, 16], sizes = [2, 16], strides = [1, 1]} : vector<2x64xf32> to vector<2x16xf32>
    %167 = vector.extract_strided_slice %164 {offsets = [0, 32], sizes = [2, 16], strides = [1, 1]} : vector<2x64xf32> to vector<2x16xf32>
    %168 = vector.extract_strided_slice %163 {offsets = [0, 48], sizes = [2, 16], strides = [1, 1]} : vector<2x64xf32> to vector<2x16xf32>
    %169 = arith.mulf %166, %151 : vector<2x16xf32>
    %170 = arith.mulf %165, %167 : vector<2x16xf32>
    %171 = arith.addf %169, %170 : vector<2x16xf32>
    %172 = math.tanh %171 : vector<2x16xf32>
    %173 = arith.mulf %168, %172 : vector<2x16xf32>
    %174 = vector.extract_strided_slice %27 {offsets = [6, 0], sizes = [1, 64], strides = [1, 1]} : vector<9x64xf32> to vector<1x64xf32>
    %175 = vector.extract_strided_slice %51 {offsets = [6, 0], sizes = [1, 64], strides = [1, 1]} : vector<9x64xf32> to vector<1x64xf32>
    %176 = tpu.concatenate %174, %175 in 0 : vector<1x64xf32>, vector<1x64xf32> -> vector<2x64xf32>
    %cst_39 = arith.constant dense<0.000000e+00> : vector<2x64xf32>
    %177 = tpu.matmul %173, %2, %cst_39 {dimension_numbers = #tpu.dot_dimension_numbers<[1], [0], [0], [1], [0, 0, 1, 1], [], []>} : vector<2x16xf32>, vector<16x64xf32>, vector<2x64xf32> -> vector<2x64xf32>
    %178 = arith.addf %176, %177 : vector<2x64xf32>
    %179 = arith.negf %178 : vector<2x64xf32>
    %180 = math.exp %179 : vector<2x64xf32>
    %cst_40 = arith.constant 1.000000e+00 : f32
    %181 = vector.broadcast %cst_40 : f32 to vector<2x64xf32>
    %182 = arith.addf %181, %180 : vector<2x64xf32>
    %183 = arith.divf %181, %182 : vector<2x64xf32>
    %184 = math.tanh %178 : vector<2x64xf32>
    %185 = vector.extract_strided_slice %183 {offsets = [0, 0], sizes = [2, 16], strides = [1, 1]} : vector<2x64xf32> to vector<2x16xf32>
    %186 = vector.extract_strided_slice %183 {offsets = [0, 16], sizes = [2, 16], strides = [1, 1]} : vector<2x64xf32> to vector<2x16xf32>
    %187 = vector.extract_strided_slice %184 {offsets = [0, 32], sizes = [2, 16], strides = [1, 1]} : vector<2x64xf32> to vector<2x16xf32>
    %188 = vector.extract_strided_slice %183 {offsets = [0, 48], sizes = [2, 16], strides = [1, 1]} : vector<2x64xf32> to vector<2x16xf32>
    %189 = arith.mulf %186, %171 : vector<2x16xf32>
    %190 = arith.mulf %185, %187 : vector<2x16xf32>
    %191 = arith.addf %189, %190 : vector<2x16xf32>
    %192 = math.tanh %191 : vector<2x16xf32>
    %193 = arith.mulf %188, %192 : vector<2x16xf32>
    %194 = vector.extract_strided_slice %27 {offsets = [7, 0], sizes = [1, 64], strides = [1, 1]} : vector<9x64xf32> to vector<1x64xf32>
    %195 = vector.extract_strided_slice %51 {offsets = [7, 0], sizes = [1, 64], strides = [1, 1]} : vector<9x64xf32> to vector<1x64xf32>
    %196 = tpu.concatenate %194, %195 in 0 : vector<1x64xf32>, vector<1x64xf32> -> vector<2x64xf32>
    %cst_41 = arith.constant dense<0.000000e+00> : vector<2x64xf32>
    %197 = tpu.matmul %193, %2, %cst_41 {dimension_numbers = #tpu.dot_dimension_numbers<[1], [0], [0], [1], [0, 0, 1, 1], [], []>} : vector<2x16xf32>, vector<16x64xf32>, vector<2x64xf32> -> vector<2x64xf32>
    %198 = arith.addf %196, %197 : vector<2x64xf32>
    %199 = arith.negf %198 : vector<2x64xf32>
    %200 = math.exp %199 : vector<2x64xf32>
    %cst_42 = arith.constant 1.000000e+00 : f32
    %201 = vector.broadcast %cst_42 : f32 to vector<2x64xf32>
    %202 = arith.addf %201, %200 : vector<2x64xf32>
    %203 = arith.divf %201, %202 : vector<2x64xf32>
    %204 = math.tanh %198 : vector<2x64xf32>
    %205 = vector.extract_strided_slice %203 {offsets = [0, 0], sizes = [2, 16], strides = [1, 1]} : vector<2x64xf32> to vector<2x16xf32>
    %206 = vector.extract_strided_slice %203 {offsets = [0, 16], sizes = [2, 16], strides = [1, 1]} : vector<2x64xf32> to vector<2x16xf32>
    %207 = vector.extract_strided_slice %204 {offsets = [0, 32], sizes = [2, 16], strides = [1, 1]} : vector<2x64xf32> to vector<2x16xf32>
    %208 = vector.extract_strided_slice %203 {offsets = [0, 48], sizes = [2, 16], strides = [1, 1]} : vector<2x64xf32> to vector<2x16xf32>
    %209 = arith.mulf %206, %191 : vector<2x16xf32>
    %210 = arith.mulf %205, %207 : vector<2x16xf32>
    %211 = arith.addf %209, %210 : vector<2x16xf32>
    %212 = math.tanh %211 : vector<2x16xf32>
    %213 = arith.mulf %208, %212 : vector<2x16xf32>
    %214 = vector.extract_strided_slice %27 {offsets = [8, 0], sizes = [1, 64], strides = [1, 1]} : vector<9x64xf32> to vector<1x64xf32>
    %215 = vector.extract_strided_slice %51 {offsets = [8, 0], sizes = [1, 64], strides = [1, 1]} : vector<9x64xf32> to vector<1x64xf32>
    %216 = tpu.concatenate %214, %215 in 0 : vector<1x64xf32>, vector<1x64xf32> -> vector<2x64xf32>
    %cst_43 = arith.constant dense<0.000000e+00> : vector<2x64xf32>
    %217 = tpu.matmul %213, %2, %cst_43 {dimension_numbers = #tpu.dot_dimension_numbers<[1], [0], [0], [1], [0, 0, 1, 1], [], []>} : vector<2x16xf32>, vector<16x64xf32>, vector<2x64xf32> -> vector<2x64xf32>
    %218 = arith.addf %216, %217 : vector<2x64xf32>
    %219 = arith.negf %218 : vector<2x64xf32>
    %220 = math.exp %219 : vector<2x64xf32>
    %cst_44 = arith.constant 1.000000e+00 : f32
    %221 = vector.broadcast %cst_44 : f32 to vector<2x64xf32>
    %222 = arith.addf %221, %220 : vector<2x64xf32>
    %223 = arith.divf %221, %222 : vector<2x64xf32>
    %224 = math.tanh %218 : vector<2x64xf32>
    %225 = vector.extract_strided_slice %223 {offsets = [0, 0], sizes = [2, 16], strides = [1, 1]} : vector<2x64xf32> to vector<2x16xf32>
    %226 = vector.extract_strided_slice %223 {offsets = [0, 16], sizes = [2, 16], strides = [1, 1]} : vector<2x64xf32> to vector<2x16xf32>
    %227 = vector.extract_strided_slice %224 {offsets = [0, 32], sizes = [2, 16], strides = [1, 1]} : vector<2x64xf32> to vector<2x16xf32>
    %228 = vector.extract_strided_slice %223 {offsets = [0, 48], sizes = [2, 16], strides = [1, 1]} : vector<2x64xf32> to vector<2x16xf32>
    %229 = arith.mulf %226, %211 : vector<2x16xf32>
    %230 = arith.mulf %225, %227 : vector<2x16xf32>
    %231 = arith.addf %229, %230 : vector<2x16xf32>
    %232 = math.tanh %231 : vector<2x16xf32>
    %233 = arith.mulf %228, %232 : vector<2x16xf32>
    %234 = vector.extract_strided_slice %73 {offsets = [0, 0], sizes = [1, 16], strides = [1, 1]} : vector<2x16xf32> to vector<1x16xf32>
    %235 = vector.extract_strided_slice %93 {offsets = [0, 0], sizes = [1, 16], strides = [1, 1]} : vector<2x16xf32> to vector<1x16xf32>
    %236 = vector.extract_strided_slice %113 {offsets = [0, 0], sizes = [1, 16], strides = [1, 1]} : vector<2x16xf32> to vector<1x16xf32>
    %237 = vector.extract_strided_slice %133 {offsets = [0, 0], sizes = [1, 16], strides = [1, 1]} : vector<2x16xf32> to vector<1x16xf32>
    %238 = vector.extract_strided_slice %153 {offsets = [0, 0], sizes = [1, 16], strides = [1, 1]} : vector<2x16xf32> to vector<1x16xf32>
    %239 = vector.extract_strided_slice %173 {offsets = [0, 0], sizes = [1, 16], strides = [1, 1]} : vector<2x16xf32> to vector<1x16xf32>
    %240 = vector.extract_strided_slice %193 {offsets = [0, 0], sizes = [1, 16], strides = [1, 1]} : vector<2x16xf32> to vector<1x16xf32>
    %241 = vector.extract_strided_slice %213 {offsets = [0, 0], sizes = [1, 16], strides = [1, 1]} : vector<2x16xf32> to vector<1x16xf32>
    %242 = vector.extract_strided_slice %233 {offsets = [0, 0], sizes = [1, 16], strides = [1, 1]} : vector<2x16xf32> to vector<1x16xf32>
    %243 = tpu.concatenate %234, %235, %236, %237, %238, %239, %240, %241, %242 in 0 : vector<1x16xf32>, vector<1x16xf32>, vector<1x16xf32>, vector<1x16xf32>, vector<1x16xf32>, vector<1x16xf32>, vector<1x16xf32>, vector<1x16xf32>, vector<1x16xf32> -> vector<9x16xf32>
    %c0_45 = arith.constant 0 : index
    %c0_46 = arith.constant 0 : index
    %c0_47 = arith.constant 0 : index
    %244 = vector.load %arg7[%c0_45, %c0_46, %c0_47] : memref<2x9x16xf32, #tpu.memory_space<vmem>>, vector<1x9x16xf32>
    %245 = vector.shape_cast %244 : vector<1x9x16xf32> to vector<9x16xf32>
    %246 = vector.shape_cast %243 : vector<9x16xf32> to vector<1x9x16xf32>
    tpu.vector_store %arg7[%c0_45, %c0_46, %c0_47], %246 {strides = array<i32>} : memref<2x9x16xf32, #tpu.memory_space<vmem>>, vector<1x9x16xf32>,
    %247 = vector.extract_strided_slice %73 {offsets = [1, 0], sizes = [1, 16], strides = [1, 1]} : vector<2x16xf32> to vector<1x16xf32>
    %248 = vector.extract_strided_slice %93 {offsets = [1, 0], sizes = [1, 16], strides = [1, 1]} : vector<2x16xf32> to vector<1x16xf32>
    %249 = vector.extract_strided_slice %113 {offsets = [1, 0], sizes = [1, 16], strides = [1, 1]} : vector<2x16xf32> to vector<1x16xf32>
    %250 = vector.extract_strided_slice %133 {offsets = [1, 0], sizes = [1, 16], strides = [1, 1]} : vector<2x16xf32> to vector<1x16xf32>
    %251 = vector.extract_strided_slice %153 {offsets = [1, 0], sizes = [1, 16], strides = [1, 1]} : vector<2x16xf32> to vector<1x16xf32>
    %252 = vector.extract_strided_slice %173 {offsets = [1, 0], sizes = [1, 16], strides = [1, 1]} : vector<2x16xf32> to vector<1x16xf32>
    %253 = vector.extract_strided_slice %193 {offsets = [1, 0], sizes = [1, 16], strides = [1, 1]} : vector<2x16xf32> to vector<1x16xf32>
    %254 = vector.extract_strided_slice %213 {offsets = [1, 0], sizes = [1, 16], strides = [1, 1]} : vector<2x16xf32> to vector<1x16xf32>
    %255 = vector.extract_strided_slice %233 {offsets = [1, 0], sizes = [1, 16], strides = [1, 1]} : vector<2x16xf32> to vector<1x16xf32>
    %256 = tpu.concatenate %247, %248, %249, %250, %251, %252, %253, %254, %255 in 0 : vector<1x16xf32>, vector<1x16xf32>, vector<1x16xf32>, vector<1x16xf32>, vector<1x16xf32>, vector<1x16xf32>, vector<1x16xf32>, vector<1x16xf32>, vector<1x16xf32> -> vector<9x16xf32>
    %c1_48 = arith.constant 1 : index
    %c0_49 = arith.constant 0 : index
    %c0_50 = arith.constant 0 : index
    %257 = vector.load %arg7[%c1_48, %c0_49, %c0_50] : memref<2x9x16xf32, #tpu.memory_space<vmem>>, vector<1x9x16xf32>
    %258 = vector.shape_cast %257 : vector<1x9x16xf32> to vector<9x16xf32>
    %259 = vector.shape_cast %256 : vector<9x16xf32> to vector<1x9x16xf32>
    tpu.vector_store %arg7[%c1_48, %c0_49, %c0_50], %259 {strides = array<i32>} : memref<2x9x16xf32, #tpu.memory_space<vmem>>, vector<1x9x16xf32>,
    return
  }
  func.func @transform_0(%arg0: i32) -> (i32, i32, i32) {
    %c0_i32 = arith.constant 0 : i32
    %c0_i32_0 = arith.constant 0 : i32
    %c0_i32_1 = arith.constant 0 : i32
    return %arg0, %c0_i32, %c0_i32_0 : i32, i32, i32
  }
  func.func @transform_1(%arg0: i32) -> (i32, i32) {
    %c0_i32 = arith.constant 0 : i32
    %c0_i32_0 = arith.constant 0 : i32
    %c0_i32_1 = arith.constant 0 : i32
    return %c0_i32, %c0_i32_0 : i32, i32
  }
  func.func @transform_2(%arg0: i32) -> (i32, i32) {
    %c0_i32 = arith.constant 0 : i32
    %c0_i32_0 = arith.constant 0 : i32
    %c0_i32_1 = arith.constant 0 : i32
    return %c0_i32, %c0_i32_0 : i32, i32
  }
  func.func @transform_3(%arg0: i32) -> (i32, i32) {
    %c0_i32 = arith.constant 0 : i32
    %c0_i32_0 = arith.constant 0 : i32
    %c0_i32_1 = arith.constant 0 : i32
    return %c0_i32, %c0_i32_0 : i32, i32
  }
  func.func @transform_4(%arg0: i32) -> (i32, i32) {
    %c0_i32 = arith.constant 0 : i32
    %c0_i32_0 = arith.constant 0 : i32
    %c0_i32_1 = arith.constant 0 : i32
    return %c0_i32, %c0_i32_0 : i32, i32
  }
  func.func @transform_5(%arg0: i32) -> (i32, i32, i32) {
    %c0_i32 = arith.constant 0 : i32
    %c0_i32_0 = arith.constant 0 : i32
    %c0_i32_1 = arith.constant 0 : i32
    return %arg0, %c0_i32, %c0_i32_0 : i32, i32, i32
  }
  func.func @transform_6(%arg0: i32) -> (i32, i32, i32) {
    %c0_i32 = arith.constant 0 : i32
    %c0_i32_0 = arith.constant 0 : i32
    %c0_i32_1 = arith.constant 0 : i32
    return %arg0, %c0_i32, %c0_i32_0 : i32, i32, i32
  }
}

</mosaic_0001>

<bundles_post_ra>
// kernel: encoder_forward.1
= control target key start
LH: loop header
LB: loop body
LE: loop exit
PB: predicated region body
PF: predicated region fallthrough
CT: control target
= control target key end

     0   :  { %v987_v0 = vmov 0   ;;  %vm42_vm0 = vcmask 64512   ;;  %vm44_vm1 = vcmask 57344   ;;  %v988_v46 = vmov 0.0   ;;  %s991_s21 = smov 32   ;;  %s992_s22 = smov 80   ;;  %s1235_s1 = inlined_call_operand.vmem [shape: f32[9,1], index: 1, kind: input, shape index: {}]   ;;  %s1236_s0 = inlined_call_operand.vmem [shape: f32[2,9,8], index: 0, kind: input, shape index: {}]   ;;  %s1237_s4 = inlined_call_operand.vmem [shape: f32[1,64], index: 4, kind: input, shape index: {}]   ;;  %s1238_s2 = inlined_call_operand.vmem [shape: f32[8,64], index: 2, kind: input, shape index: {}]   ;;  %s1239_s3 = inlined_call_operand.vmem [shape: f32[16,64], index: 3, kind: input, shape index: {}]   ;;  %s1240_s5 = inlined_call_operand.vmem [shape: f32[2,9,8], index: 5, kind: output, shape index: {0}]   ;;  %s1241_s6 = inlined_call_operand.vmem [shape: f32[2,9,16], index: 6, kind: output, shape index: {1}]  }
   0x1   :  { %905 = vset.pattern.permute.xlu0 %v987_v0  ;;  %v22_v1 = vld [vmem:[%s1235_s1] sm:$0xff]  ;;  %v23_v2 = vld [vmem:[%s1235_s1 + $0x8] sm:$0x1]  ;;  %v1042_v5 = vld [vmem:[%s1236_s0 + $0x10] sm:$0xff]  ;;  %vm188_vm10 = vcmask 1040384   ;;  %vm190_vm15 = vcmask 130048  }
   0x2   :  { %32 = vperm.xlu0 %905, %v22_v1   ;;  %v1037_v4 = vld [vmem:[%s1236_s0] sm:$0xff]  ;;  %v1047_v6 = vld [vmem:[%s1236_s0 + $0x8] sm:$0x1]  ;;  %v1052_v7 = vld [vmem:[%s1236_s0 + $0x18] sm:$0x1] }
   0x3   :  { %v24_v43 = vld [vmem:[%s1238_s2] sm:$0xff]  ;;  %v1075_v44 = vld [vmem:[%s1239_s3 + $0x8] sm:$0xff] }
   0x4   :  { %177 = vmatpush.msra.mxu1 %v24_v43  ;;  %105 = vmatpush.msra.mxu0 %v24_v43  ;;  %v1080_v45 = vld [vmem:[%s1239_s3] sm:$0xff] }
   0x5   :  { %208 = vmatpush.msra.mxu2 %v1075_v44  ;;  %275 = vmatpush.msra.mxu3 %v1075_v44 }
   0x6   :  { %479 = vmatpush.msrb.mxu0 %v1075_v44  ;;  %547 = vmatpush.msrb.mxu1 %v1075_v44 }
   0x7   :  { %209 = vmatpush.msra.mxu2 %v1080_v45  ;;  %276 = vmatpush.msra.mxu3 %v1080_v45 }
   0x8   :  { %210 = vmatmul.f32.vlgmr.msra.gmra.mxu2 %v988_v46  ;;  %480 = vmatpush.msrb.mxu0 %v1080_v45 }
   0x9   :  { %411 = vmatpush.msrb.mxu3 %v1075_v44  ;;  %343 = vmatpush.msrb.mxu2 %v1075_v44 }
   0xa   :  { %37 = vperm.xlu0 %905, %v23_v2   ;;  %548 = vmatpush.msrb.mxu1 %v1080_v45 }
   0xb   :  { %412 = vmatpush.msrb.mxu3 %v1080_v45  ;;  %344 = vmatpush.msrb.mxu2 %v1080_v45 }
   0xd   :  { %615 = vmatpush.msra.mxu2 %v1075_v44 }
   0xf   :  { %616 = vmatpush.msra.mxu2 %v1080_v45 }
  0x74   :  { %v33_v3 = vpop.permute.xlu0 %32 }
  0x75   :  { %v40_v8 = vmul.f32 %v33_v3, %v1037_v4  ;;  %v116_v9 = vmul.f32 %v1042_v5, %v33_v3 }
  0x77   :  { %v43_v13 = vsel %vm42_vm0, %v40_v8, 0.0  ;;  %v118_v14 = vsel %vm42_vm0, %v116_v9, 0.0 }
  0x7c   :  { %v38_v10 = vpop.permute.xlu0 %37 }
  0x7d   :  { %v41_v11 = vmul.f32 %v38_v10, %v1047_v6  ;;  %v117_v12 = vmul.f32 %v1052_v7, %v38_v10 }
  0x7f   :  { %v45_v15 = vsel %vm44_vm1, %v41_v11, 0.0  ;;  %v119_v16 = vsel %vm44_vm1, %v117_v12, 0.0 }
  0x80   :  { %v46_v17 = vadd.f32 %v45_v15, %v43_v13  ;;  %v120_v18 = vadd.f32 %v119_v16, %v118_v14 }
  0x82   :  { %v47_v19 = vrot.slane %v46_v17, 4  ;;  %v121_v20 = vrot.slane %v120_v18, 4 }
  0x84   :  { %v122_v21 = vadd.f32 %v121_v20, %v120_v18  ;;  %v48_v22 = vadd.f32 %v47_v19, %v46_v17 }
  0x86   :  { %v123_v23 = vrot.slane %v122_v21, 2  ;;  %v49_v24 = vrot.slane %v48_v22, 2 }
  0x88   :  { %v124_v25 = vadd.f32 %v123_v23, %v122_v21  ;;  %v50_v27 = vadd.f32 %v49_v24, %v48_v22 }
  0x8a   :  { %v125_v26 = vrot.slane %v124_v25, 1  ;;  %v51_v30 = vrot.slane %v50_v27, 1 }
  0x8b   :  { %v211_v17 = vpop.f32.mrf.mxu2 }
  0x8c   :  { %v126_v28 = vadd.f32 %v125_v26, %v124_v25  ;;  %v52_v31 = vadd.f32 %v51_v30, %v50_v27 }
  0x8e   :  { %v127_v29 = vsel %vm42_vm0, %v126_v28, -inf  ;;  %v53_v32 = vsel %vm42_vm0, %v52_v31, -inf }
  0x8f   :  { %128 = vmax.xlane.f32.xlu1 %v127_v29 }
  0x97   :  { %54 = vmax.xlane.f32.xlu1 %v53_v32 }
 0x102   :  { %v129_v33 = vpop.xlane.xlu1 %128 }
 0x103   :  { %v130_v34 = vsub.f32 %v126_v28, %v129_v33 }
 0x105   :  { %v131_v35 = vmul.f32 1.442695, %v130_v34 }
 0x107   :  { %907 = vpow2.f32 %v131_v35 }
 0x10a   :  { %v55_v36 = vpop.xlane.xlu1 %54 }
 0x10b   :  { %v56_v37 = vsub.f32 %v52_v31, %v55_v36 }
 0x10d   :  { %v908_v38 = vpop.eup %907  ;;  %v57_v39 = vmul.f32 1.442695, %v56_v37 }
 0x10e   :  { %v133_v40 = vsel %vm42_vm0, %v908_v38, 0.0 }
 0x10f   :  { %909 = vpow2.f32 %v57_v39  ;;  %134 = vadd.xlane.f32.xlu2 %v133_v40 }
 0x115   :  { %v1065_v41 = vpop.eup %909 }
 0x116   :  { %v59_v42 = vsel %vm42_vm0, %v1065_v41, 0.0 }
 0x117   :  { %60 = vadd.xlane.f32.xlu2 %v59_v42 }
 0x182   :  { %v135_v47 = vpop.xlane.xlu2 %134 }
 0x183   :  { %911 = vrcp.f32 %v135_v47  ;;  %v147_v52 = vand.u32 2147483648, %v135_v47  ;;  %v145_v54 = vand.u32 2147483647, %v135_v47  ;;  %vm141_vm3 = vweird.f32 %v135_v47 }
 0x185   :  { %v148_v57 = vor.u32 1.1754944e-38, %v147_v52  ;;  %vm146_vm5 = vcmp.eq.f32.partialorder %v145_v54, 8.507059e+37 }
 0x189   :  { %v912_v48 = vpop.eup %911 }
 0x18a   :  { %v137_v49 = vmul.f32 %v912_v48, %v135_v47  ;;  %v61_v50 = vpop.xlane.xlu2 %60  ;;  %vm142_vm2 = vweird.f32 %v912_v48 }
 0x18b   :  { %913 = vrcp.f32 %v61_v50  ;;  %vm143_vm4 = vmor %vm141_vm3, %vm142_vm2  ;;  %v71_v63 = vand.u32 2147483647, %v61_v50  ;;  %v73_v0 = vand.u32 2147483648, %v61_v50  ;;  %vm67_vm7 = vweird.f32 %v61_v50 }
 0x18c   :  { %v138_v51 = vsub.f32 1.0, %v137_v49 }
 0x18d   :  { %v74_v9 = vor.u32 1.1754944e-38, %v73_v0  ;;  %vm72_vm9 = vcmp.eq.f32.partialorder %v71_v63, 8.507059e+37 }
 0x18e   :  { %v139_v53 = vmul.f32 %v912_v48, %v138_v51 }
 0x190   :  { %v140_v55 = vadd.f32 %v912_v48, %v139_v53 }
 0x191   :  { %v914_v56 = vpop.eup %913 }
 0x192   :  { %v63_v58 = vmul.f32 %v914_v56, %v61_v50  ;;  %v144_v59 = vsel %vm143_vm4, %v912_v48, %v140_v55  ;;  %vm68_vm6 = vweird.f32 %v914_v56 }
 0x193   :  { %v149_v60 = vsel %vm146_vm5, %v148_v57, %v144_v59  ;;  %vm69_vm8 = vmor %vm67_vm7, %vm68_vm6 }
 0x194   :  { %v64_v61 = vsub.f32 1.0, %v63_v58  ;;  %v150_v62 = vmul.f32 %v908_v38, %v149_v60 }
 0x196   :  { %v65_v1 = vmul.f32 %v914_v56, %v64_v61  ;;  %v151_v2 = vmul.f32 %v1042_v5, %v150_v62  ;;  %v152_v3 = vmul.f32 %v1052_v7, %v150_v62 }
 0x198   :  { %v66_v8 = vadd.f32 %v914_v56, %v65_v1  ;;  %876 = vst.msk [vmem:[%s1240_s5 + $0x10] sm:$0xff] %vm42_vm0, %v151_v2  ;;  %878 = vmatmul.msk.f32.vlgmr.msra.gmra.mxu1 %vm42_vm0, %v151_v2 }
 0x199   :  { %877 = vst.msk [vmem:[%s1240_s5 + $0x18] sm:$0x1] %vm44_vm1, %v152_v3 }
 0x19a   :  { %v70_v5 = vsel %vm69_vm8, %v914_v56, %v66_v8  ;;  %vm809_vm8 = vcmask 1041408  }
 0x19b   :  { %v75_v10 = vsel %vm72_vm9, %v74_v9, %v70_v5 }
 0x19c   :  { %v76_v7 = vmul.f32 %v1065_v41, %v75_v10 }
 0x19e   :  { %v77_v11 = vmul.f32 %v76_v7, %v1037_v4  ;;  %v78_v12 = vmul.f32 %v76_v7, %v1047_v6  ;;  %v1126_v4 = vld [vmem:[%s1237_s4] ss:$0 sm:$0xff]  ;;  %s989_s4 = smov 96  }
 0x1a0   :  { %79 = vst.msk [vmem:[%s1240_s5] sm:$0xff] %vm42_vm0, %v77_v11  ;;  %872 = vmatmul.msk.f32.vlgmr.msra.gmra.mxu0 %vm42_vm0, %v77_v11  ;;  %879 = vmatmul.msk.f32.gmra.mxu1 %vm42_vm0, %v152_v3 }
 0x1a1   :  { %80 = vst.msk [vmem:[%s1240_s5 + $0x8] sm:$0x1] %vm44_vm1, %v78_v12  ;;  %750 = vmatpush.msra.mxu0 %v1075_v44  ;;  %s990_s5 = smov 16  }
 0x1a3   :  { %751 = vmatpush.msra.mxu0 %v1080_v45 }
 0x1a8   :  { %873 = vmatmul.msk.f32.gmra.mxu0 %vm42_vm0, %v78_v12 }
 0x215   :  { %v179_v6 = vpop.f32.mrf.mxu1 }
 0x216   :  { %v180_v13 = vadd.f32 %v1126_v4, %v179_v6 }
 0x218   :  { %v186_v16 = vrot.slane %v180_v13, 7  ;;  %v321_v18 = vrot.slane %v180_v13, 1  ;;  %v389_v19 = vrot.slane %v180_v13, 2  ;;  %v457_v20 = vrot.slane %v180_v13, 3 }
 0x219   :  { %v525_v21 = vrot.slane %v180_v13, 4  ;;  %v593_v22 = vrot.slane %v180_v13, 5  ;;  %v661_v26 = vrot.slane %v180_v13, 6 }
 0x21d   :  { %v107_v14 = vpop.f32.mrf.mxu0 }
 0x21e   :  { %v108_v15 = vadd.f32 %v1126_v4, %v107_v14 }
 0x220   :  { %v189_v23 = vsel %vm188_vm10, %v108_v15, %v186_v16  ;;  %v253_v24 = vrot.slane %v108_v15, 1  ;;  %v319_v25 = vrot.slane %v108_v15, 2  ;;  %v387_v28 = vrot.slane %v108_v15, 3 }
 0x221   :  { %v214_v27 = vadd.f32 %v211_v17, %v189_v23  ;;  %v455_v29 = vrot.slane %v108_v15, 4  ;;  %v523_v30 = vrot.slane %v108_v15, 5  ;;  %v591_v33 = vrot.slane %v108_v15, 6 }
 0x222   :  { %v255_v31 = vsel %vm188_vm10, %v253_v24, %v180_v13  ;;  %v1133_v32 = vsel %vm188_vm10, %v319_v25, %v321_v18  ;;  %v659_v34 = vrot.slane %v108_v15, 7  ;;  %v1136_v35 = vsel %vm188_vm10, %v387_v28, %v389_v19 }
 0x223   :  { %915 = vtanh.f32 %v214_v27  ;;  %v1139_v36 = vsel %vm188_vm10, %v455_v29, %v457_v20  ;;  %v1142_v37 = vsel %vm188_vm10, %v523_v30, %v525_v21  ;;  %v1145_v38 = vsel %vm188_vm10, %v591_v33, %v593_v22 }
 0x224   :  { %v1148_v39 = vsel %vm188_vm10, %v659_v34, %v661_v26  ;;  %v880_v41 = vmul.f32 -1.442695, %v214_v27 }
 0x226   :  { %917 = vpow2.f32 %v880_v41 }
 0x229   :  { %v916_v40 = vpop.eup %915 }
 0x22a   :  { %237 = vrot.lane.b32.xlu0 %v916_v40, %s989_s4 }
 0x22c   :  { %v918_v42 = vpop.eup %917 }
 0x22d   :  { %v218_v43 = vadd.f32 1.0, %v918_v42 }
 0x22f   :  { %919 = vrcp.f32 %v218_v43  ;;  %v230_v51 = vand.u32 2147483648, %v218_v43  ;;  %vm224_vm12 = vweird.f32 %v218_v43  ;;  %v228_v52 = vand.u32 2147483647, %v218_v43 }
 0x231   :  { %v231_v54 = vor.u32 1.1754944e-38, %v230_v51  ;;  %vm229_vm14 = vcmp.eq.f32.partialorder %v228_v52, 8.507059e+37 }
 0x235   :  { %v920_v46 = vpop.eup %919 }
 0x236   :  { %v220_v47 = vmul.f32 %v920_v46, %v218_v43  ;;  %vm225_vm11 = vweird.f32 %v920_v46 }
 0x237   :  { %vm226_vm13 = vmor %vm224_vm12, %vm225_vm11 }
 0x238   :  { %v221_v48 = vsub.f32 1.0, %v220_v47 }
 0x23a   :  { %v222_v49 = vmul.f32 %v920_v46, %v221_v48 }
 0x23c   :  { %v223_v50 = vadd.f32 %v920_v46, %v222_v49 }
 0x23e   :  { %v227_v53 = vsel %vm226_vm13, %v920_v46, %v223_v50 }
 0x23f   :  { %v232_v56 = vsel %vm229_vm14, %v231_v54, %v227_v53  ;;  %vm811_vm14 = vcmask 1042432  }
 0x240   :  { %v235_v58 = vmul.f32 0.0, %v232_v56 }
 0x29c   :  { %v238_v55 = vpop.permute.xlu0 %237 }
 0x29d   :  { %v240_v57 = vmul.f32 %v238_v55, %v232_v56 }
 0x29f   :  { %242 = vrot.lane.b32.xlu1 %v240_v57, %s990_s5 }
 0x311   :  { %v243_v59 = vpop.permute.xlu1 %242 }
 0x312   :  { %v245_v60 = vadd.f32 %v243_v59, %v235_v58 }
 0x314   :  { %921 = vtanh.f32 %v245_v60 }
 0x31a   :  { %v922_v61 = vpop.eup %921 }
 0x31b   :  { %248 = vrot.lane.b32.xlu2 %v922_v61, %s991_s21 }
 0x375   :  { %v249_v62 = vpop.permute.xlu2 %248 }
 0x376   :  { %v1153_v63 = vmul.f32 %v249_v62, %v232_v56 }
 0x378   :  { %257 = vrot.lane.b32.xlu0 %v1153_v63, %s992_s22  ;;  %v832_v57 = vrot.slane %v1153_v63, 1 }
 0x3ea   :  { %v258_v0 = vpop.permute.xlu0 %257 }
 0x3eb   :  { %881 = vmatmul.msk.f32.vlgmr.msra.gmra.mxu3 %vm190_vm15, %v258_v0 }
 0x3ec   :  { %683 = vmatpush.msra.mxu3 %v1075_v44 }
 0x3ee   :  { %684 = vmatpush.msra.mxu3 %v1080_v45 }
 0x46e   :  { %v278_v1 = vpop.f32.mrf.mxu3 }
 0x46f   :  { %v281_v2 = vadd.f32 %v278_v1, %v255_v31 }
 0x471   :  { %923 = vtanh.f32 %v281_v2  ;;  %v882_v8 = vmul.f32 -1.442695, %v281_v2 }
 0x473   :  { %925 = vpow2.f32 %v882_v8 }
 0x477   :  { %v924_v3 = vpop.eup %923 }
 0x478   :  { %304 = vrot.lane.b32.xlu0 %v924_v3, %s989_s4 }
 0x479   :  { %v926_v9 = vpop.eup %925 }
 0x47a   :  { %v285_v5 = vadd.f32 1.0, %v926_v9 }
 0x47c   :  { %927 = vrcp.f32 %v285_v5  ;;  %v297_v44 = vand.u32 2147483648, %v285_v5  ;;  %vm291_vm1 = vweird.f32 %v285_v5  ;;  %v295_v45 = vand.u32 2147483647, %v285_v5 }
 0x47e   :  { %v298_v14 = vor.u32 1.1754944e-38, %v297_v44  ;;  %vm296_vm3 = vcmp.eq.f32.partialorder %v295_v45, 8.507059e+37 }
 0x482   :  { %v928_v10 = vpop.eup %927 }
 0x483   :  { %v287_v7 = vmul.f32 %v928_v10, %v285_v5  ;;  %vm292_vm0 = vweird.f32 %v928_v10 }
 0x484   :  { %vm293_vm2 = vmor %vm291_vm1, %vm292_vm0 }
 0x485   :  { %v288_v11 = vsub.f32 1.0, %v287_v7 }
 0x487   :  { %v289_v12 = vmul.f32 %v928_v10, %v288_v11 }
 0x489   :  { %v290_v6 = vadd.f32 %v928_v10, %v289_v12 }
 0x48b   :  { %v294_v13 = vsel %vm293_vm2, %v928_v10, %v290_v6 }
 0x48c   :  { %v299_v16 = vsel %vm296_vm3, %v298_v14, %v294_v13 }
 0x48d   :  { %v302_v18 = vmul.f32 %v299_v16, %v245_v60 }
 0x4ea   :  { %v305_v15 = vpop.permute.xlu0 %304 }
 0x4eb   :  { %v307_v17 = vmul.f32 %v305_v15, %v299_v16 }
 0x4ed   :  { %309 = vrot.lane.b32.xlu0 %v307_v17, %s990_s5 }
 0x55f   :  { %v310_v19 = vpop.permute.xlu0 %309 }
 0x560   :  { %v312_v20 = vadd.f32 %v310_v19, %v302_v18 }
 0x562   :  { %929 = vtanh.f32 %v312_v20 }
 0x568   :  { %v930_v21 = vpop.eup %929 }
 0x569   :  { %315 = vrot.lane.b32.xlu2 %v930_v21, %s991_s21 }
 0x5c3   :  { %v316_v22 = vpop.permute.xlu2 %315 }
 0x5c4   :  { %v318_v23 = vmul.f32 %v316_v22, %v299_v16 }
 0x5c6   :  { %325 = vrot.lane.b32.xlu1 %v318_v23, %s992_s22  ;;  %v794_v54 = vrot.slane %v318_v23, 7  ;;  %v847_v61 = vsel %vm188_vm10, %v832_v57, %v318_v23 }
 0x5c8   :  { %v808_v60 = vsel %vm188_vm10, %v1153_v63, %v794_v54 }
 0x638   :  { %v326_v24 = vpop.permute.xlu1 %325 }
 0x639   :  { %883 = vmatmul.msk.f32.vlgmr.msrb.gmra.mxu2 %vm190_vm15, %v326_v24 }
 0x6bc   :  { %v346_v25 = vpop.f32.mrf.mxu2 }
 0x6bd   :  { %v349_v26 = vadd.f32 %v346_v25, %v1133_v32 }
 0x6bf   :  { %931 = vtanh.f32 %v349_v26  ;;  %v884_v28 = vmul.f32 -1.442695, %v349_v26 }
 0x6c1   :  { %933 = vpow2.f32 %v884_v28  ;;  %v1181_v28 = vpop.f32.mrf.mxu0 }
 0x6c5   :  { %v932_v27 = vpop.eup %931 }
 0x6c6   :  { %372 = vrot.lane.b32.xlu0 %v932_v27, %s989_s4 }
 0x6c7   :  { %v934_v29 = vpop.eup %933 }
 0x6c8   :  { %v353_v30 = vadd.f32 1.0, %v934_v29 }
 0x6ca   :  { %935 = vrcp.f32 %v353_v30  ;;  %v365_v42 = vand.u32 2147483648, %v353_v30  ;;  %vm359_vm5 = vweird.f32 %v353_v30  ;;  %v363_v43 = vand.u32 2147483647, %v353_v30 }
 0x6cc   :  { %v366_v46 = vor.u32 1.1754944e-38, %v365_v42  ;;  %vm364_vm7 = vcmp.eq.f32.partialorder %v363_v43, 8.507059e+37 }
 0x6d0   :  { %v936_v31 = vpop.eup %935 }
 0x6d1   :  { %v355_v33 = vmul.f32 %v936_v31, %v353_v30  ;;  %vm360_vm4 = vweird.f32 %v936_v31 }
 0x6d2   :  { %vm361_vm6 = vmor %vm359_vm5, %vm360_vm4  ;;  %vm813_vm4 = vcmask 1043456  }
 0x6d3   :  { %v356_v34 = vsub.f32 1.0, %v355_v33 }
 0x6d5   :  { %v357_v40 = vmul.f32 %v936_v31, %v356_v34 }
 0x6d7   :  { %v358_v41 = vadd.f32 %v936_v31, %v357_v40 }
 0x6d9   :  { %v362_v32 = vsel %vm361_vm6, %v936_v31, %v358_v41 }
 0x6da   :  { %v367_v48 = vsel %vm364_vm7, %v366_v46, %v362_v32 }
 0x6db   :  { %v370_v50 = vmul.f32 %v367_v48, %v312_v20 }
 0x738   :  { %v373_v47 = vpop.permute.xlu0 %372 }
 0x739   :  { %v375_v49 = vmul.f32 %v373_v47, %v367_v48 }
 0x73b   :  { %377 = vrot.lane.b32.xlu2 %v375_v49, %s990_s5 }
 0x795   :  { %v378_v51 = vpop.permute.xlu2 %377 }
 0x796   :  { %v380_v52 = vadd.f32 %v378_v51, %v370_v50 }
 0x798   :  { %937 = vtanh.f32 %v380_v52 }
 0x79e   :  { %v938_v53 = vpop.eup %937 }
 0x79f   :  { %383 = vrot.lane.b32.xlu1 %v938_v53, %s991_s21 }
 0x811   :  { %v384_v55 = vpop.permute.xlu1 %383 }
 0x812   :  { %v386_v56 = vmul.f32 %v384_v55, %v367_v48 }
 0x814   :  { %v796_v58 = vrot.slane %v386_v56, 6  ;;  %v834_v59 = vrot.slane %v386_v56, 7  ;;  %393 = vrot.lane.b32.xlu0 %v386_v56, %s992_s22 }
 0x816   :  { %v810_v62 = vsel %vm809_vm8, %v808_v60, %v796_v58  ;;  %v848_v0 = vsel %vm809_vm8, %v847_v61, %v834_v59 }
 0x886   :  { %v394_v1 = vpop.permute.xlu0 %393 }
 0x887   :  { %885 = vmatmul.msk.f32.vlgmr.msrb.gmra.mxu3 %vm190_vm15, %v394_v1  ;;  %v1189_v1 = vpop.f32.mrf.mxu1 }
 0x90a   :  { %v414_v2 = vpop.f32.mrf.mxu3 }
 0x90b   :  { %v417_v3 = vadd.f32 %v414_v2, %v1136_v35 }
 0x90d   :  { %939 = vtanh.f32 %v417_v3  ;;  %v886_v9 = vmul.f32 -1.442695, %v417_v3 }
 0x90f   :  { %941 = vpow2.f32 %v886_v9 }
 0x913   :  { %v940_v8 = vpop.eup %939 }
 0x914   :  { %440 = vrot.lane.b32.xlu2 %v940_v8, %s989_s4 }
 0x915   :  { %v942_v5 = vpop.eup %941 }
 0x916   :  { %v421_v10 = vadd.f32 1.0, %v942_v5 }
 0x918   :  { %943 = vrcp.f32 %v421_v10  ;;  %v433_v44 = vand.u32 2147483648, %v421_v10  ;;  %vm427_vm11 = vweird.f32 %v421_v10  ;;  %v431_v45 = vand.u32 2147483647, %v421_v10 }
 0x91a   :  { %v434_v13 = vor.u32 1.1754944e-38, %v433_v44  ;;  %vm432_vm13 = vcmp.eq.f32.partialorder %v431_v45, 8.507059e+37 }
 0x91e   :  { %v944_v63 = vpop.eup %943 }
 0x91f   :  { %v423_v7 = vmul.f32 %v944_v63, %v421_v10  ;;  %vm428_vm9 = vweird.f32 %v944_v63 }
 0x920   :  { %vm429_vm12 = vmor %vm427_vm11, %vm428_vm9  ;;  %vm815_vm9 = vcmask 1044480  }
 0x921   :  { %v424_v11 = vsub.f32 1.0, %v423_v7 }
 0x923   :  { %v425_v12 = vmul.f32 %v944_v63, %v424_v11 }
 0x925   :  { %v426_v6 = vadd.f32 %v944_v63, %v425_v12 }
 0x927   :  { %v430_v35 = vsel %vm429_vm12, %v944_v63, %v426_v6 }
 0x928   :  { %v435_v15 = vsel %vm432_vm13, %v434_v13, %v430_v35 }
 0x929   :  { %v438_v17 = vmul.f32 %v435_v15, %v380_v52 }
 0x96e   :  { %v441_v14 = vpop.permute.xlu2 %440 }
 0x96f   :  { %v443_v16 = vmul.f32 %v441_v14, %v435_v15 }
 0x971   :  { %445 = vrot.lane.b32.xlu1 %v443_v16, %s990_s5 }
 0x9e3   :  { %v446_v18 = vpop.permute.xlu1 %445 }
 0x9e4   :  { %v448_v19 = vadd.f32 %v446_v18, %v438_v17 }
 0x9e6   :  { %945 = vtanh.f32 %v448_v19 }
 0x9ec   :  { %v946_v20 = vpop.eup %945 }
 0x9ed   :  { %451 = vrot.lane.b32.xlu0 %v946_v20, %s991_s21 }
 0xa5f   :  { %v452_v21 = vpop.permute.xlu0 %451 }
 0xa60   :  { %v454_v22 = vmul.f32 %v452_v21, %v435_v15 }
 0xa62   :  { %v798_v23 = vrot.slane %v454_v22, 5  ;;  %v836_v24 = vrot.slane %v454_v22, 6  ;;  %461 = vrot.lane.b32.xlu2 %v454_v22, %s992_s22 }
 0xa64   :  { %v812_v25 = vsel %vm811_vm14, %v810_v62, %v798_v23  ;;  %v849_v26 = vsel %vm811_vm14, %v848_v0, %v836_v24 }
 0xabc   :  { %v462_v27 = vpop.permute.xlu2 %461 }
 0xabd   :  { %887 = vmatmul.msk.f32.vlgmr.msrb.gmra.mxu0 %vm190_vm15, %v462_v27 }
 0xb3a   :  { %v482_v29 = vpop.f32.mrf.mxu0 }
 0xb3b   :  { %v485_v30 = vadd.f32 %v482_v29, %v1139_v36 }
 0xb3d   :  { %947 = vtanh.f32 %v485_v30  ;;  %v888_v33 = vmul.f32 -1.442695, %v485_v30 }
 0xb3f   :  { %949 = vpow2.f32 %v888_v33 }
 0xb43   :  { %v948_v31 = vpop.eup %947 }
 0xb44   :  { %508 = vrot.lane.b32.xlu1 %v948_v31, %s989_s4 }
 0xb45   :  { %v950_v34 = vpop.eup %949 }
 0xb46   :  { %v489_v40 = vadd.f32 1.0, %v950_v34 }
 0xb48   :  { %951 = vrcp.f32 %v489_v40  ;;  %v501_v47 = vand.u32 2147483648, %v489_v40  ;;  %vm495_vm1 = vweird.f32 %v489_v40  ;;  %v499_v48 = vand.u32 2147483647, %v489_v40 }
 0xb4a   :  { %v502_v49 = vor.u32 1.1754944e-38, %v501_v47  ;;  %vm500_vm3 = vcmp.eq.f32.partialorder %v499_v48, 8.507059e+37 }
 0xb4e   :  { %v952_v41 = vpop.eup %951 }
 0xb4f   :  { %v491_v42 = vmul.f32 %v952_v41, %v489_v40  ;;  %vm496_vm0 = vweird.f32 %v952_v41 }
 0xb50   :  { %vm497_vm2 = vmor %vm495_vm1, %vm496_vm0  ;;  %vm817_vm0 = vcmask 1045504  }
 0xb51   :  { %v492_v43 = vsub.f32 1.0, %v491_v42 }
 0xb53   :  { %v493_v32 = vmul.f32 %v952_v41, %v492_v43 }
 0xb55   :  { %v494_v46 = vadd.f32 %v952_v41, %v493_v32 }
 0xb57   :  { %v498_v36 = vsel %vm497_vm2, %v952_v41, %v494_v46 }
 0xb58   :  { %v503_v51 = vsel %vm500_vm3, %v502_v49, %v498_v36 }
 0xb59   :  { %v506_v53 = vmul.f32 %v503_v51, %v448_v19 }
 0xbb6   :  { %v509_v50 = vpop.permute.xlu1 %508 }
 0xbb7   :  { %v511_v52 = vmul.f32 %v509_v50, %v503_v51 }
 0xbb9   :  { %513 = vrot.lane.b32.xlu0 %v511_v52, %s990_s5 }
 0xc2b   :  { %v514_v54 = vpop.permute.xlu0 %513 }
 0xc2c   :  { %v516_v55 = vadd.f32 %v514_v54, %v506_v53 }
 0xc2e   :  { %953 = vtanh.f32 %v516_v55 }
 0xc34   :  { %v954_v56 = vpop.eup %953 }
 0xc35   :  { %519 = vrot.lane.b32.xlu2 %v954_v56, %s991_s21 }
 0xc8f   :  { %v520_v57 = vpop.permute.xlu2 %519 }
 0xc90   :  { %v522_v58 = vmul.f32 %v520_v57, %v503_v51 }
 0xc92   :  { %v800_v59 = vrot.slane %v522_v58, 4  ;;  %v838_v60 = vrot.slane %v522_v58, 5  ;;  %529 = vrot.lane.b32.xlu1 %v522_v58, %s992_s22 }
 0xc94   :  { %v814_v61 = vsel %vm813_vm4, %v812_v25, %v800_v59  ;;  %v850_v62 = vsel %vm813_vm4, %v849_v26, %v838_v60 }
 0xd04   :  { %v530_v0 = vpop.permute.xlu1 %529 }
 0xd05   :  { %889 = vmatmul.msk.f32.vlgmr.msrb.gmra.mxu1 %vm190_vm15, %v530_v0 }
 0xd82   :  { %v550_v2 = vpop.f32.mrf.mxu1 }
 0xd83   :  { %v553_v3 = vadd.f32 %v550_v2, %v1142_v37 }
 0xd85   :  { %955 = vtanh.f32 %v553_v3  ;;  %v890_v9 = vmul.f32 -1.442695, %v553_v3 }
 0xd87   :  { %957 = vpow2.f32 %v890_v9 }
 0xd8b   :  { %v956_v8 = vpop.eup %955 }
 0xd8c   :  { %576 = vrot.lane.b32.xlu0 %v956_v8, %s989_s4 }
 0xd8d   :  { %v958_v5 = vpop.eup %957 }
 0xd8e   :  { %v557_v10 = vadd.f32 1.0, %v958_v5 }
 0xd90   :  { %959 = vrcp.f32 %v557_v10  ;;  %v569_v44 = vand.u32 2147483648, %v557_v10  ;;  %vm563_vm6 = vweird.f32 %v557_v10  ;;  %v567_v45 = vand.u32 2147483647, %v557_v10 }
 0xd92   :  { %v570_v35 = vor.u32 1.1754944e-38, %v569_v44  ;;  %vm568_vm8 = vcmp.eq.f32.partialorder %v567_v45, 8.507059e+37 }
 0xd96   :  { %v960_v63 = vpop.eup %959 }
 0xd97   :  { %v559_v7 = vmul.f32 %v960_v63, %v557_v10  ;;  %vm564_vm5 = vweird.f32 %v960_v63 }
 0xd98   :  { %vm565_vm7 = vmor %vm563_vm6, %vm564_vm5  ;;  %vm819_vm5 = vcmask 1046528  }
 0xd99   :  { %v560_v11 = vsub.f32 1.0, %v559_v7 }
 0xd9b   :  { %v561_v12 = vmul.f32 %v960_v63, %v560_v11 }
 0xd9d   :  { %v562_v6 = vadd.f32 %v960_v63, %v561_v12 }
 0xd9f   :  { %v566_v37 = vsel %vm565_vm7, %v960_v63, %v562_v6 }
 0xda0   :  { %v571_v14 = vsel %vm568_vm8, %v570_v35, %v566_v37 }
 0xda1   :  { %v574_v16 = vmul.f32 %v571_v14, %v516_v55 }
 0xdfe   :  { %v577_v13 = vpop.permute.xlu0 %576 }
 0xdff   :  { %v579_v15 = vmul.f32 %v577_v13, %v571_v14 }
 0xe01   :  { %581 = vrot.lane.b32.xlu2 %v579_v15, %s990_s5 }
 0xe5b   :  { %v582_v17 = vpop.permute.xlu2 %581 }
 0xe5c   :  { %v584_v18 = vadd.f32 %v582_v17, %v574_v16 }
 0xe5e   :  { %961 = vtanh.f32 %v584_v18 }
 0xe64   :  { %v962_v19 = vpop.eup %961 }
 0xe65   :  { %587 = vrot.lane.b32.xlu1 %v962_v19, %s991_s21 }
 0xed7   :  { %v588_v20 = vpop.permute.xlu1 %587 }
 0xed8   :  { %v590_v21 = vmul.f32 %v588_v20, %v571_v14 }
 0xeda   :  { %v802_v22 = vrot.slane %v590_v21, 3  ;;  %v840_v23 = vrot.slane %v590_v21, 4  ;;  %597 = vrot.lane.b32.xlu0 %v590_v21, %s992_s22 }
 0xedc   :  { %v816_v24 = vsel %vm815_vm9, %v814_v61, %v802_v22  ;;  %v851_v25 = vsel %vm815_vm9, %v850_v62, %v840_v23  ;;  %vm830_vm9 = vcmask 122880  }
 0xf4c   :  { %v598_v26 = vpop.permute.xlu0 %597 }
 0xf4d   :  { %891 = vmatmul.msk.f32.vlgmr.msra.gmra.mxu2 %vm190_vm15, %v598_v26 }
 0xfd0   :  { %v618_v27 = vpop.f32.mrf.mxu2 }
 0xfd1   :  { %v621_v29 = vadd.f32 %v618_v27, %v1145_v38 }
 0xfd3   :  { %963 = vtanh.f32 %v621_v29  ;;  %v892_v31 = vmul.f32 -1.442695, %v621_v29 }
 0xfd5   :  { %965 = vpow2.f32 %v892_v31 }
 0xfd9   :  { %v964_v30 = vpop.eup %963 }
 0xfda   :  { %644 = vrot.lane.b32.xlu2 %v964_v30, %s989_s4 }
 0xfdb   :  { %v966_v33 = vpop.eup %965 }
 0xfdc   :  { %v625_v34 = vadd.f32 1.0, %v966_v33 }
 0xfde   :  { %967 = vrcp.f32 %v625_v34  ;;  %v637_v46 = vand.u32 2147483648, %v625_v34  ;;  %vm631_vm12 = vweird.f32 %v625_v34  ;;  %v635_v47 = vand.u32 2147483647, %v625_v34 }
 0xfe0   :  { %v638_v48 = vor.u32 1.1754944e-38, %v637_v46  ;;  %vm636_vm14 = vcmp.eq.f32.partialorder %v635_v47, 8.507059e+37 }
 0xfe4   :  { %v968_v40 = vpop.eup %967 }
 0xfe5   :  { %v627_v41 = vmul.f32 %v968_v40, %v625_v34  ;;  %vm632_vm11 = vweird.f32 %v968_v40 }
 0xfe6   :  { %vm633_vm13 = vmor %vm631_vm12, %vm632_vm11 }
 0xfe7   :  { %v628_v42 = vsub.f32 1.0, %v627_v41 }
 0xfe9   :  { %v629_v43 = vmul.f32 %v968_v40, %v628_v42 }
 0xfeb   :  { %v630_v32 = vadd.f32 %v968_v40, %v629_v43 }
 0xfed   :  { %v634_v38 = vsel %vm633_vm13, %v968_v40, %v630_v32 }
 0xfee   :  { %v639_v49 = vsel %vm636_vm14, %v638_v48, %v634_v38 }
 0xfef   :  { %v642_v51 = vmul.f32 %v639_v49, %v584_v18 }
0x1034   :  { %v645_v36 = vpop.permute.xlu2 %644 }
0x1035   :  { %v647_v50 = vmul.f32 %v645_v36, %v639_v49 }
0x1037   :  { %649 = vrot.lane.b32.xlu1 %v647_v50, %s990_s5 }
0x10a9   :  { %v650_v52 = vpop.permute.xlu1 %649 }
0x10aa   :  { %v652_v53 = vadd.f32 %v650_v52, %v642_v51 }
0x10ac   :  { %969 = vtanh.f32 %v652_v53 }
0x10b2   :  { %v970_v54 = vpop.eup %969 }
0x10b3   :  { %655 = vrot.lane.b32.xlu0 %v970_v54, %s991_s21 }
0x1125   :  { %v656_v55 = vpop.permute.xlu0 %655 }
0x1126   :  { %v658_v56 = vmul.f32 %v656_v55, %v639_v49 }
0x1128   :  { %v804_v57 = vrot.slane %v658_v56, 2  ;;  %v842_v58 = vrot.slane %v658_v56, 3  ;;  %665 = vrot.lane.b32.xlu2 %v658_v56, %s992_s22 }
0x112a   :  { %v818_v59 = vsel %vm817_vm0, %v816_v24, %v804_v57  ;;  %v852_v60 = vsel %vm817_vm0, %v851_v25, %v842_v58  ;;  %v183_v24 = vadd.f32 %v1126_v4, %v1189_v1  ;;  %v111_v25 = vadd.f32 %v1126_v4, %v1181_v28 }
0x112c   :  { %v728_v26 = vrot.slane %v183_v24, 7 }
0x112e   :  { %v730_v27 = vsel %vm188_vm10, %v111_v25, %v728_v26 }
0x1182   :  { %v666_v61 = vpop.permute.xlu2 %665 }
0x1183   :  { %893 = vmatmul.msk.f32.vlgmr.msra.gmra.mxu3 %vm190_vm15, %v666_v61 }
0x1206   :  { %v686_v62 = vpop.f32.mrf.mxu3 }
0x1207   :  { %v689_v0 = vadd.f32 %v686_v62, %v1148_v39 }
0x1209   :  { %971 = vtanh.f32 %v689_v0  ;;  %v894_v3 = vmul.f32 -1.442695, %v689_v0 }
0x120b   :  { %973 = vpow2.f32 %v894_v3 }
0x120f   :  { %v972_v2 = vpop.eup %971 }
0x1210   :  { %712 = vrot.lane.b32.xlu1 %v972_v2, %s989_s4 }
0x1211   :  { %v974_v8 = vpop.eup %973 }
0x1212   :  { %v693_v9 = vadd.f32 1.0, %v974_v8 }
0x1214   :  { %975 = vrcp.f32 %v693_v9  ;;  %v705_v12 = vand.u32 2147483648, %v693_v9  ;;  %vm699_vm2 = vweird.f32 %v693_v9  ;;  %v703_v6 = vand.u32 2147483647, %v693_v9 }
0x1216   :  { %v706_v44 = vor.u32 1.1754944e-38, %v705_v12  ;;  %vm704_vm4 = vcmp.eq.f32.partialorder %v703_v6, 8.507059e+37 }
0x121a   :  { %v976_v5 = vpop.eup %975 }
0x121b   :  { %v695_v10 = vmul.f32 %v976_v5, %v693_v9  ;;  %vm700_vm1 = vweird.f32 %v976_v5 }
0x121c   :  { %vm701_vm3 = vmor %vm699_vm2, %vm700_vm1 }
0x121d   :  { %v696_v63 = vsub.f32 1.0, %v695_v10 }
0x121f   :  { %v697_v7 = vmul.f32 %v976_v5, %v696_v63 }
0x1221   :  { %v698_v11 = vadd.f32 %v976_v5, %v697_v7 }
0x1223   :  { %v702_v39 = vsel %vm701_vm3, %v976_v5, %v698_v11 }
0x1224   :  { %v707_v37 = vsel %vm704_vm4, %v706_v44, %v702_v39 }
0x1225   :  { %v710_v13 = vmul.f32 %v707_v37, %v652_v53 }
0x1282   :  { %v713_v45 = vpop.permute.xlu1 %712 }
0x1283   :  { %v715_v35 = vmul.f32 %v713_v45, %v707_v37 }
0x1285   :  { %717 = vrot.lane.b32.xlu0 %v715_v35, %s990_s5 }
0x12f7   :  { %v718_v14 = vpop.permute.xlu0 %717 }
0x12f8   :  { %v720_v15 = vadd.f32 %v718_v14, %v710_v13 }
0x12fa   :  { %977 = vtanh.f32 %v720_v15 }
0x1300   :  { %v978_v16 = vpop.eup %977 }
0x1301   :  { %723 = vrot.lane.b32.xlu2 %v978_v16, %s991_s21 }
0x135b   :  { %v724_v17 = vpop.permute.xlu2 %723 }
0x135c   :  { %v726_v18 = vmul.f32 %v724_v17, %v707_v37 }
0x135e   :  { %v806_v19 = vrot.slane %v726_v18, 1  ;;  %v844_v20 = vrot.slane %v726_v18, 2  ;;  %732 = vrot.lane.b32.xlu1 %v726_v18, %s992_s22 }
0x1360   :  { %v820_v21 = vsel %vm819_vm5, %v818_v59, %v806_v19  ;;  %v853_v22 = vsel %vm819_vm5, %v852_v60, %v844_v20 }
0x13d0   :  { %v733_v23 = vpop.permute.xlu1 %732 }
0x13d1   :  { %895 = vmatmul.msk.f32.vlgmr.msra.gmra.mxu0 %vm190_vm15, %v733_v23 }
0x144e   :  { %v753_v29 = vpop.f32.mrf.mxu0 }
0x144f   :  { %v756_v30 = vadd.f32 %v753_v29, %v730_v27 }
0x1451   :  { %979 = vtanh.f32 %v756_v30  ;;  %v896_v33 = vmul.f32 -1.442695, %v756_v30 }
0x1453   :  { %981 = vpow2.f32 %v896_v33 }
0x1457   :  { %v980_v31 = vpop.eup %979 }
0x1458   :  { %779 = vrot.lane.b32.xlu0 %v980_v31, %s989_s4 }
0x1459   :  { %v982_v34 = vpop.eup %981 }
0x145a   :  { %v760_v40 = vadd.f32 1.0, %v982_v34 }
0x145c   :  { %983 = vrcp.f32 %v760_v40  ;;  %v772_v43 = vand.u32 2147483648, %v760_v40  ;;  %vm766_vm10 = vweird.f32 %v760_v40  ;;  %v770_v32 = vand.u32 2147483647, %v760_v40 }
0x145e   :  { %v773_v47 = vor.u32 1.1754944e-38, %v772_v43  ;;  %vm771_vm8 = vcmp.eq.f32.partialorder %v770_v32, 8.507059e+37 }
0x1460   :  { %823 = vrot.lane.b32.xlu0 %v820_v21, %s992_s22 }
0x1462   :  { %v984_v1 = vpop.eup %983 }
0x1463   :  { %v762_v41 = vmul.f32 %v984_v1, %v760_v40  ;;  %vm767_vm6 = vweird.f32 %v984_v1 }
0x1464   :  { %vm768_vm7 = vmor %vm766_vm10, %vm767_vm6 }
0x1465   :  { %v763_v42 = vsub.f32 1.0, %v762_v41 }
0x1467   :  { %v764_v4 = vmul.f32 %v984_v1, %v763_v42 }
0x1469   :  { %v765_v28 = vadd.f32 %v984_v1, %v764_v4 }
0x146b   :  { %v769_v46 = vsel %vm768_vm7, %v984_v1, %v765_v28 }
0x146c   :  { %v774_v48 = vsel %vm771_vm8, %v773_v47, %v769_v46 }
0x146d   :  { %v777_v50 = vmul.f32 %v774_v48, %v720_v15 }
0x14ca   :  { %v780_v38 = vpop.permute.xlu0 %779 }
0x14cb   :  { %v782_v36 = vmul.f32 %v780_v38, %v774_v48 }
0x14cd   :  { %784 = vrot.lane.b32.xlu2 %v782_v36, %s990_s5 }
0x14d2   :  { %v824_v49 = vpop.permute.xlu0 %823 }
0x14d3   :  { %829 = vst.msk [vmem:[%s1241_s6] sm:$0xff] %vm190_vm15, %v824_v49 }
0x1527   :  { %v785_v51 = vpop.permute.xlu2 %784 }
0x1528   :  { %v787_v52 = vadd.f32 %v785_v51, %v777_v50 }
0x152a   :  { %985 = vtanh.f32 %v787_v52 }
0x1530   :  { %v986_v53 = vpop.eup %985 }
0x1531   :  { %790 = vrot.lane.b32.xlu1 %v986_v53, %s991_s21 }
0x1539   :  { %855 = vrot.lane.b32.xlu1 %v853_v22, %s992_s22 }
0x15a3   :  { %v791_v54 = vpop.permute.xlu1 %790 }
0x15a4   :  { %v793_v55 = vmul.f32 %v791_v54, %v774_v48 }
0x15a6   :  { %v846_v56 = vrot.slane %v793_v55, 1  ;;  %825 = vrot.lane.b32.xlu2 %v793_v55, %s992_s22 }
0x15a8   :  { %857 = vrot.lane.b32.xlu0 %v846_v56, %s992_s22 }
0x15ab   :  { %v856_v57 = vpop.permute.xlu1 %855 }
0x15ac   :  { %897 = vst.msk [vmem:[%s1241_s6 + $0x10] sm:$0xff] %vm190_vm15, %v856_v57 }
0x1600   :  { %v826_v58 = vpop.permute.xlu2 %825 }
0x1601   :  { %831 = vst.msk [vmem:[%s1241_s6 + $0x8] sm:$0x1] %vm830_vm9, %v826_v58 }
0x161a   :  { %v858_v59 = vpop.permute.xlu0 %857 }
0x161b   :  { %898 = vst.msk [vmem:[%s1241_s6 + $0x18] sm:$0x1] %vm830_vm9, %v858_v59 }

</bundles_post_ra>
